<compile_context>
chip_gen: v7x
topology: tpu7x:2x2x1
jax: 0.10.0
libtpu: 0.0.40
codegen_flags: <defaults>
</compile_context>

<pallas_src>
import jax
import jax.numpy as jnp
from jax.experimental import pallas as pl
from jax.experimental.pallas import tpu as pltpu


# ----------------------------------------------------------------------------
# Pallas kernel: one M-tile of the wrapped module's hot path.
#   h = x @ W1 + b1 ; y = tanh(h) @ W2 + b2      (only y is written out)
# ----------------------------------------------------------------------------
def _wrapped_mlp_kernel(x_ref, w1_ref, b1_ref, w2_ref, b2_ref, y_ref):
    # x_ref  : [TM, D]  bf16   (one M-tile of tokens)
    # w1_ref : [D,  H]  bf16   (resident across the whole grid)
    # b1_ref : [1,  H]  f32
    # w2_ref : [H,  Op] bf16   (Op = O padded to a multiple of 128)
    # b2_ref : [1,  Op] f32
    # y_ref  : [TM, Op] f32    (lane-dense store)
    h = jnp.dot(x_ref[...], w1_ref[...],
                preferred_element_type=jnp.float32) + b1_ref[...]
    a = jnp.tanh(h)                                  # f32 transcendental (EUP)
    y = jnp.dot(a.astype(w2_ref.dtype), w2_ref[...],
                preferred_element_type=jnp.float32) + b2_ref[...]
    y_ref[...] = y.astype(y_ref.dtype)


def wrapped_mlp_output(x2d, w1, b1, w2, b2, *, tm=128):
    """Pallas call for the OUTPUT branch only (tuple element 1)."""
    M, D = x2d.shape
    H = w1.shape[1]
    O = w2.shape[1]

    # ---- wrapper-side layout plumbing (not compute) --------------------------
    # Lane-dense output: pad O up to a multiple of 128 so stores are unmasked.
    Op = pl.cdiv(O, 128) * 128
    # Exact M tiling: pad M up to a multiple of the M-tile.
    Mp = pl.cdiv(M, tm) * tm

    if Mp != M:
        x2d = jnp.pad(x2d, ((0, Mp - M), (0, 0)))
    if Op != O:
        w2 = jnp.pad(w2, ((0, 0), (0, Op - O)))
        b2 = jnp.pad(b2, ((0, 0), (0, Op - O)))

    # bf16 operands / f32 accumulation (bf16-native MXU on v6e/v7x);
    # biases and tanh stay in f32.
    x_bf = x2d.astype(jnp.bfloat16)
    w1_bf = w1.astype(jnp.bfloat16)
    w2_bf = w2.astype(jnp.bfloat16)
    b1_f = b1.astype(jnp.float32)
    b2_f = b2.astype(jnp.float32)

    grid_spec = pl.GridSpec(
        grid=(Mp // tm,),
        in_specs=[
            pl.BlockSpec((tm, D), lambda i: (i, 0)),   # x: tiled over M
            pl.BlockSpec((D, H), lambda i: (0, 0)),    # W1: resident
            pl.BlockSpec((1, H), lambda i: (0, 0)),    # b1: resident
            pl.BlockSpec((H, Op), lambda i: (0, 0)),   # W2: resident
            pl.BlockSpec((1, Op), lambda i: (0, 0)),   # b2: resident
        ],
        out_specs=pl.BlockSpec((tm, Op), lambda i: (i, 0)),
    )

    y = pl.pallas_call(
        _wrapped_mlp_kernel,
        out_shape=jax.ShapeDtypeStruct((Mp, Op), jnp.float32),
        grid_spec=grid_spec,
        compiler_params=pltpu.CompilerParams(
            # M-tiles are independent -> shard the grid across TensorCores
            # (v7x has 2 TCs/chip; neutral on v5e/v6e).
            dimension_semantics=("parallel",),
            vmem_limit_bytes=32 * 1024 * 1024,
        ),
    )(x_bf, w1_bf, b1_f, w2_bf, b2_f)

    return y[:M, :O]


# ----------------------------------------------------------------------------
# ApplyWrapper: returns wrapped(x)[forward_pos]
# ----------------------------------------------------------------------------
class ApplyWrapper:
    def __init__(self, wrapped, forward_pos=1):
        self.wrapped = wrapped
        self.forward_pos = forward_pos

    def __call__(self, x):
        return self.wrapped(x)[self.forward_pos]


if __name__ == "__main__":
    # Small but TPU-friendly shapes: feature dims are multiples of 128 (lane
    # dense) and M = B*S = 256 gives the tiled grid two 128-row steps.
    B, S, D, H, O = 2, 128, 128, 128, 128

    key = jax.random.PRNGKey(0)
    kx, k1, k2, k3, k4 = jax.random.split(key, 5)

    x = jax.random.normal(kx, (B, S, D), dtype=jnp.float32)
    w1 = jax.random.normal(k1, (D, H), dtype=jnp.float32) * 0.1
    b1 = jax.random.normal(k2, (1, H), dtype=jnp.float32) * 0.1
    w2 = jax.random.normal(k3, (H, O), dtype=jnp.float32) * 0.1
    b2 = jax.random.normal(k4, (1, O), dtype=jnp.float32) * 0.1

    def wrapped_fn(xin):
        """Synthetic wrapped module: returns the tuple (hidden, output).

        Only the output (element 1) goes through the Pallas kernel. The hidden
        (element 0) is discarded by ApplyWrapper(forward_pos=1); under jit it
        is dead code and never computed nor written back.
        """
        x2d = xin.reshape(B * S, D)
        hidden = x2d @ w1 + b1                 # unused by ApplyWrapper -> DCE'd
        y = wrapped_mlp_output(x2d, w1, b1, w2, b2)
        return (hidden.reshape(B, S, H), y.reshape(B, S, O))

    model = ApplyWrapper(wrapped_fn, forward_pos=1)
    forward = jax.jit(model.__call__)

    out = jax.block_until_ready(forward(x))
    assert out.shape == (B, S, O)

    # Pure-JAX reference with the same bf16 operand quantization (f32 accum).
    xq = x.reshape(B * S, D).astype(jnp.bfloat16).astype(jnp.float32)
    w1q = w1.astype(jnp.bfloat16).astype(jnp.float32)
    w2q = w2.astype(jnp.bfloat16).astype(jnp.float32)
    h_ref = xq @ w1q + b1
    a_ref = jnp.tanh(h_ref).astype(jnp.bfloat16).astype(jnp.float32)
    y_ref = (a_ref @ w2q + b2).reshape(B, S, O)

    assert jnp.allclose(out, y_ref, atol=1e-2, rtol=1e-2), (
        "max abs err = %f" % float(jnp.max(jnp.abs(out - y_ref))))

    print("KERNEL_OK")
</pallas_src>

<mosaic_0001>
module attributes {stable_mosaic.version = 11 : i64} {
  func.func @_wrapped_mlp_kernel(%arg0: i32, %arg1: memref<128x128xbf16, #tpu.memory_space<vmem>>, %arg2: memref<128x128xbf16, #tpu.memory_space<vmem>>, %arg3: memref<1x128xf32, #tpu.memory_space<vmem>>, %arg4: memref<128x128xbf16, #tpu.memory_space<vmem>>, %arg5: memref<1x128xf32, #tpu.memory_space<vmem>>, %arg6: memref<128x128xf32, #tpu.memory_space<vmem>>) attributes {dimension_semantics = [#tpu.dimension_semantics<parallel>], iteration_bounds = array<i64: 2>, scalar_prefetch = 0 : i64, scratch_operands = 0 : i64, tpu.core_type = #tpu.core_type<tc>, window_params = [{transform_indices = @transform_0, window_bounds = array<i64: 128, 128>}, {pipeline_mode = #tpu.pipeline_mode<synchronous>, transform_indices = @transform_1, window_bounds = array<i64: 128, 128>}, {pipeline_mode = #tpu.pipeline_mode<synchronous>, transform_indices = @transform_2, window_bounds = array<i64: 1, 128>}, {pipeline_mode = #tpu.pipeline_mode<synchronous>, transform_indices = @transform_3, window_bounds = array<i64: 128, 128>}, {pipeline_mode = #tpu.pipeline_mode<synchronous>, transform_indices = @transform_4, window_bounds = array<i64: 1, 128>}, {transform_indices = @transform_5, window_bounds = array<i64: 128, 128>}]} {
    %c0 = arith.constant 0 : index
    %c0_0 = arith.constant 0 : index
    %0 = vector.load %arg1[%c0, %c0_0] : memref<128x128xbf16, #tpu.memory_space<vmem>>, vector<128x128xbf16>
    %c0_1 = arith.constant 0 : index
    %c0_2 = arith.constant 0 : index
    %1 = vector.load %arg2[%c0_1, %c0_2] : memref<128x128xbf16, #tpu.memory_space<vmem>>, vector<128x128xbf16>
    %cst = arith.constant dense<0.000000e+00> : vector<128x128xf32>
    %2 = tpu.matmul %0, %1, %cst {dimension_numbers = #tpu.dot_dimension_numbers<[1], [0], [0], [1], [0, 0, 1, 1], [], []>} : vector<128x128xbf16>, vector<128x128xbf16>, vector<128x128xf32> -> vector<128x128xf32>
    %c0_3 = arith.constant 0 : index
    %c0_4 = arith.constant 0 : index
    %3 = vector.load %arg3[%c0_3, %c0_4] : memref<1x128xf32, #tpu.memory_space<vmem>>, vector<1x128xf32>
    %4 = vector.broadcast %3 : vector<1x128xf32> to vector<128x128xf32>
    %5 = arith.addf %2, %4 : vector<128x128xf32>
    %6 = math.tanh %5 : vector<128x128xf32>
    %7 = arith.truncf %6 : vector<128x128xf32> to vector<128x128xbf16>
    %c0_5 = arith.constant 0 : index
    %c0_6 = arith.constant 0 : index
    %8 = vector.load %arg4[%c0_5, %c0_6] : memref<128x128xbf16, #tpu.memory_space<vmem>>, vector<128x128xbf16>
    %cst_7 = arith.constant dense<0.000000e+00> : vector<128x128xf32>
    %9 = tpu.matmul %7, %8, %cst_7 {dimension_numbers = #tpu.dot_dimension_numbers<[1], [0], [0], [1], [0, 0, 1, 1], [], []>} : vector<128x128xbf16>, vector<128x128xbf16>, vector<128x128xf32> -> vector<128x128xf32>
    %c0_8 = arith.constant 0 : index
    %c0_9 = arith.constant 0 : index
    %10 = vector.load %arg5[%c0_8, %c0_9] : memref<1x128xf32, #tpu.memory_space<vmem>>, vector<1x128xf32>
    %11 = vector.broadcast %10 : vector<1x128xf32> to vector<128x128xf32>
    %12 = arith.addf %9, %11 : vector<128x128xf32>
    %c0_10 = arith.constant 0 : index
    %c0_11 = arith.constant 0 : index
    %13 = vector.load %arg6[%c0_10, %c0_11] : memref<128x128xf32, #tpu.memory_space<vmem>>, vector<128x128xf32>
    tpu.vector_store %arg6[%c0_10, %c0_11], %12 {strides = array<i32>} : memref<128x128xf32, #tpu.memory_space<vmem>>, vector<128x128xf32>,
    return
  }
  func.func @transform_0(%arg0: i32) -> (i32, i32) {
    %c0_i32 = arith.constant 0 : i32
    %c0_i32_0 = arith.constant 0 : i32
    return %arg0, %c0_i32 : i32, i32
  }
  func.func @transform_1(%arg0: i32) -> (i32, i32) {
    %c0_i32 = arith.constant 0 : i32
    %c0_i32_0 = arith.constant 0 : i32
    %c0_i32_1 = arith.constant 0 : i32
    return %c0_i32, %c0_i32_0 : i32, i32
  }
  func.func @transform_2(%arg0: i32) -> (i32, i32) {
    %c0_i32 = arith.constant 0 : i32
    %c0_i32_0 = arith.constant 0 : i32
    %c0_i32_1 = arith.constant 0 : i32
    return %c0_i32, %c0_i32_0 : i32, i32
  }
  func.func @transform_3(%arg0: i32) -> (i32, i32) {
    %c0_i32 = arith.constant 0 : i32
    %c0_i32_0 = arith.constant 0 : i32
    %c0_i32_1 = arith.constant 0 : i32
    return %c0_i32, %c0_i32_0 : i32, i32
  }
  func.func @transform_4(%arg0: i32) -> (i32, i32) {
    %c0_i32 = arith.constant 0 : i32
    %c0_i32_0 = arith.constant 0 : i32
    %c0_i32_1 = arith.constant 0 : i32
    return %c0_i32, %c0_i32_0 : i32, i32
  }
  func.func @transform_5(%arg0: i32) -> (i32, i32) {
    %c0_i32 = arith.constant 0 : i32
    %c0_i32_0 = arith.constant 0 : i32
    return %arg0, %c0_i32 : i32, i32
  }
}

</mosaic_0001>

<bundles_post_ra>
// kernel: a_call__.1
= control target key start
LH: loop header
LB: loop body
LE: loop exit
PB: predicated region body
PF: predicated region fallthrough
CT: control target
= control target key end

     0   :  { %10 = vsyncpa [#allocation3], 0  ;;  %s1261_s0 = inlined_call_operand.vmem [shape: bf16[256,128], index: 0, kind: input, shape index: {}]   ;;  %s1262_s1 = inlined_call_operand.vmem [shape: bf16[128,128], index: 1, kind: input, shape index: {}]   ;;  %s1263_s2 = inlined_call_operand.vmem [shape: f32[1,128], index: 2, kind: input, shape index: {}]   ;;  %s1264_s3 = inlined_call_operand.vmem [shape: bf16[128,128], index: 3, kind: input, shape index: {}]   ;;  %s1265_s4 = inlined_call_operand.vmem [shape: f32[1,128], index: 4, kind: input, shape index: {}]   ;;  %s1266_s5 = inlined_call_operand.hbm [shape: f32[256,128], index: 5, kind: output, shape index: {}]  }
   0x1   :  { %12 = vsyncpa [#allocation3 + $0x1], 0  ;;  %s1072_s18 = smov 0   ;;  %s1074_s19 = smov 0  }
   0x2   :  { %s1076_s20 = smov 0   ;;  %s1078_s21 = smov 0  }
   0x3 LB: > { %s1093_s22 = sadd.s32 4294967295, %s1037_s21   ;;  %s743_s23 = sadd.s32 4294967294, %s1037_s21   ;;  %s1037_s21 = sphi %s1078_s21, %s1272_s21   ;;  %s1033_s20 = sphi %s1076_s20, %s1271_s20   ;;  %s1029_s19 = sphi %s1074_s19, %s1270_s19   ;;  %s1025_s18 = sphi %s1072_s18, %s1269_s18  }
   0x4   : > { %s1097_s24 = sadd.s32 1, %s1037_s21   ;;  %s135_s25 = sadd.s32 1, %s1033_s20 }
   0x5   : > { %s132_s26 = ssub.s32 %s1037_s21, %s1097_s24  ;;  %p145_p0 = scmp.ne.s32.totalorder %s1033_s20, %s1029_s19 }
   0x6   : > { %p133_p1 = scmp.eq.s32.totalorder %s132_s26, 0  ;;  %p146_p2 = scmp.eq.s32.totalorder %s1093_s22, 1 }
   0x7   : > { %p151_p3 = scmp.ne.s32.totalorder %s1029_s19, %s1025_s18  ;;  %p152_p4 = scmp.eq.s32.totalorder %s743_s23, 1 }
   0x8   : > { %s1108_s27 = scalar_select %p133_p1, %s1033_s20, %s135_s25  }
   0x9   : > { %p1110_p5 = por %p146_p2, %p145_p0  ;;  %p1114_p6 = por %p152_p4, %p151_p3 }
   0xa   : > { %p746_p7 = scmp.ge.s32.totalorder %s1037_s21, 1  ;;  %p191_p8 = scmp.lt.s32.totalorder %s1037_s21, 3 }
   0xc   : > { %p192_p9 = pnand %p746_p7, %p191_p8 }
   0xd   : > { %v919_v0 = vld [vmem:[%s1262_s1] sm:$0xff] (!%p192_p9)   ;;  %s748_s7 = sshll.u32 (!%p192_p9), %s1093_s22, 4  ;;  %v920_v1 = vld [vmem:[%s1262_s1 + $0x8] sm:$0xff] (!%p192_p9)   ;;  %v921_v2 = vld [vmem:[%s1262_s1 + $0x10] sm:$0xff] (!%p192_p9)   ;;  %s781_s23 = sshll.u32 (!%p192_p9), %s1093_s22, 11 }
   0xe   : > { %195 = sbr.rel (%p192_p9) target bundleno = 533 (0x215), region = 40  ;;  %p220_p10 = scmp.lt.s32.totalorder (!%p192_p9), %s748_s7, 31  ;;  %814 = vmatprep.subr.bf16.mxu0 (!%p192_p9), %v919_v0  ;;  %v922_v3 = vld [vmem:[%s1262_s1 + $0x18] sm:$0xff] (!%p192_p9)   ;;  %v923_v5 = vld [vmem:[%s1262_s1 + $0x20] sm:$0xff] (!%p192_p9)   ;;  %v924_v6 = vld [vmem:[%s1262_s1 + $0x28] sm:$0xff] (!%p192_p9)  }
   0xf   : > { %815 = vmatpush3.bf16.msra.mxu0 (!%p192_p9), %v919_v0  ;;  %v935_v7 = vld [vmem:[%s1264_s3] sm:$0xff] (!%p192_p9)   ;;  %v936_v8 = vld [vmem:[%s1264_s3 + $0x8] sm:$0xff] (!%p192_p9)   ;;  %v925_v9 = vld [vmem:[%s1262_s1 + $0x30] sm:$0xff] (!%p192_p9)   ;;  %s1211_s6 = scalar_lea.hbm (!%p192_p9), %s1266_s5, %s781_s23 }
  0x10   : > { %816 = vmatprep.subr.bf16.mxu0 (!%p192_p9), %v920_v1  ;;  %846 = vmatprep.subr.bf16.mxu1 (!%p192_p9), %v935_v7  ;;  %v937_v10 = vld [vmem:[%s1264_s3 + $0x10] sm:$0xff] (!%p192_p9)   ;;  %v926_v11 = vld [vmem:[%s1262_s1 + $0x38] sm:$0xff] (!%p192_p9)   ;;  %v939_v20 = vld [vmem:[%s1264_s3 + $0x20] sm:$0xff] (!%p192_p9)  }
  0x11   : > { %847 = vmatpush3.bf16.msra.mxu1 (!%p192_p9), %v935_v7  ;;  %v938_v19 = vld [vmem:[%s1264_s3 + $0x18] sm:$0xff] (!%p192_p9)   ;;  %v940_v21 = vld [vmem:[%s1264_s3 + $0x28] sm:$0xff] (!%p192_p9)   ;;  %v941_v22 = vld [vmem:[%s1264_s3 + $0x30] sm:$0xff] (!%p192_p9)  }
  0x12   : > { %848 = vmatprep.subr.bf16.mxu1 (!%p192_p9), %v936_v8  ;;  %v942_v23 = vld [vmem:[%s1264_s3 + $0x38] sm:$0xff] (!%p192_p9)   ;;  %v750_v24 = vld [vmem:[%s1263_s2] ss:$0 sm:$0xff] (!%p192_p9) }
  0x13   : > { %817 = vmatpush3.bf16.msra.mxu0 (!%p192_p9), %v920_v1 }
  0x14   : > { %818 = vmatprep.subr.bf16.mxu0 (!%p192_p9), %v921_v2 }
  0x15   : > { %s1274_s7 = smov (!%p220_p10, %s748_s7), 31  ;;  %849 = vmatpush3.bf16.msra.mxu1 %v936_v8 }
  0x16   : > { %s749_s12 = sshll.u32 %s1274_s7, 2  ;;  %850 = vmatprep.subr.bf16.mxu1 %v937_v10  ;;  %s1039_s7 = smov [#allocation2]  }
  0x17   : > { %s1133_s15 = scalar_lea.vmem %s1261_s0, %s749_s12  ;;  %819 = vmatpush3.bf16.msra.mxu0 %v921_v2  ;;  %s216_s12 = sand.u32 1, %s1029_s19  }
  0x18   : > { %v927_v4 = vld [vmem:[%s1133_s15] sm:$0xff]   ;;  %820 = vmatprep.subr.bf16.mxu0 %v922_v3  ;;  %v928_v12 = vld [vmem:[%s1133_s15 + $0x8] sm:$0xff]   ;;  %v929_v13 = vld [vmem:[%s1133_s15 + $0x10] sm:$0xff]   ;;  %s747_s13 = sshll.u32 %s216_s12, 7  ;;  %s1220_s22 = scalar_lea.sflag [#allocation3], %s216_s12 }
  0x19   : > { %830 = vmatprep.mubr.bf16.mxu0 %v927_v4  ;;  %851 = vmatpush3.bf16.msra.mxu1 %v937_v10  ;;  %v930_v14 = vld [vmem:[%s1133_s15 + $0x18] sm:$0xff]   ;;  %v931_v15 = vld [vmem:[%s1133_s15 + $0x20] sm:$0xff]   ;;  %v932_v16 = vld [vmem:[%s1133_s15 + $0x28] sm:$0xff]   ;;  %s1191_s17 = scalar_lea.vmem [#allocation2], %s747_s13  ;;  %s979_s8 = sshll.u32 %s1039_s7, 4  ;;  %s980_s8 = int_to_ptr.vmem [resolvable:$false] %s979_s8 }
  0x1a   : > { %v933_v17 = vld [vmem:[%s1133_s15 + $0x30] sm:$0xff]   ;;  %v934_v18 = vld [vmem:[%s1133_s15 + $0x38] sm:$0xff]   ;;  %852 = vmatprep.subr.bf16.mxu1 %v938_v19  ;;  %s681_s25 = sshll.u32 %s1191_s17, 4  ;;  %s981_s9 = scalar_lea.vmem %s980_s8, 4096  ;;  %s1213_s25 = int_to_ptr.vmem [resolvable:$true] %s681_s25 }
  0x1b   : > { %821 = vmatpush3.bf16.msra.mxu0 %v922_v3  ;;  %s975_s15 = scalar_lea.vmem %s1213_s25, 2048  ;;  %p982_p0 = scmp.lt.s32.totalorder %s1213_s25, %s980_s8 }
  0x1c   : > { %822 = vmatprep.subr.bf16.mxu0 %v923_v5  ;;  %p976_p11 = scmp.ne.s32.totalorder %s1213_s25, %s975_s15  ;;  %p983_p1 = scmp.lt.s32.totalorder %s981_s9, %s975_s15 }
  0x1d   : > { %853 = vmatpush3.bf16.msra.mxu1 %v938_v19 }
  0x1e   : > { %854 = vmatprep.subr.bf16.mxu1 %v939_v20  ;;  %p977_p12 = pnand %p976_p11, %p1110_p5  ;;  %p984_p2 = por %p983_p1, %p982_p0 }
  0x1f   : > { %823 = vmatpush3.bf16.msra.mxu0 %v923_v5 }
  0x20   : > { %824 = vmatprep.subr.bf16.mxu0 %v924_v6  ;;  %p978_p13 = pneg %p977_p12 }
  0x21   : > { %855 = vmatpush3.bf16.msra.mxu1 %v939_v20 }
  0x22   : > { %856 = vmatprep.subr.bf16.mxu1 %v940_v21  ;;  %p985_p3 = pnand %p984_p2, %p978_p13 }
  0x23   : > { %825 = vmatpush3.bf16.msra.mxu0 %v924_v6 }
  0x24   : > { %826 = vmatprep.subr.bf16.mxu0 %v925_v9 }
  0x25   : > { %857 = vmatpush3.bf16.msra.mxu1 %v940_v21 }
  0x26   : > { %858 = vmatprep.subr.bf16.mxu1 %v941_v22 }
  0x27   : > { %827 = vmatpush3.bf16.msra.mxu0 %v925_v9 }
  0x28   : > { %828 = vmatprep.subr.bf16.mxu0 %v926_v11 }
  0x29   : > { %859 = vmatpush3.bf16.msra.mxu1 %v941_v22 }
  0x2a   : > { %860 = vmatprep.subr.bf16.mxu1 %v942_v23 }
  0x2b   : > { %829 = vmatpush3.bf16.msra.mxu0 %v926_v11 }
  0x2d   : > { %861 = vmatpush3.bf16.msra.mxu1 %v942_v23 }
  0x2e   : > { %831 = vmatmul.mubr.bf16.vlgmr.msra.gmra.mrb[0].mxu0 %v928_v12 }
  0x2f   : > { %834 = vmatprep.mubr.bf16.mxu0 %v929_v13 }
  0x36   : > { %835 = vmatmul.mubr.bf16.gmra.mrb[4].mxu0 %v930_v14 }
  0x37   : > { %838 = vmatprep.mubr.bf16.mxu0 %v931_v15 }
  0x3e   : > { %839 = vmatmul.mubr.bf16.gmra.mrb[8].mxu0 %v932_v16 }
  0x3f   : > { %842 = vmatprep.mubr.bf16.mxu0 %v933_v17  ;;  %v767_v17 = vld [vmem:[%s1265_s4] ss:$0 sm:$0xff] }
  0x46   : > { %843 = vmatmul.mubr.bf16.gmra.mrb[12].mxu0 %v934_v18 }
 0x101   : > { %v832_v25 = vpop.f32.mrb[0].mxu0 }
 0x102   : > { %v405_v26 = vadd.f32 %v832_v25, %v750_v24  ;;  %v396_v27 = vpop.f32.mrb[1].mxu0 }
 0x103   : > { %v397_v28 = vadd.f32 %v750_v24, %v396_v27  ;;  %v833_v29 = vpop.f32.mrb[2].mxu0 }
 0x104   : > { %943 = vtanh.f32 %v405_v26  ;;  %v408_v30 = vadd.f32 %v833_v29, %v750_v24  ;;  %v399_v31 = vpop.f32.mrb[3].mxu0 }
 0x105   : > { %945 = vtanh.f32 %v397_v28  ;;  %v400_v32 = vadd.f32 %v750_v24, %v399_v31 }
 0x106   : > { %947 = vtanh.f32 %v408_v30 }
 0x107   : > { %949 = vtanh.f32 %v400_v32 }
 0x109   : > { %v836_v33 = vpop.f32.mrb[4].mxu0 }
 0x10a   : > { %v421_v34 = vadd.f32 %v836_v33, %v750_v24  ;;  %v412_v35 = vpop.f32.mrb[5].mxu0 }
 0x10b   : > { %v413_v36 = vadd.f32 %v750_v24, %v412_v35  ;;  %v837_v37 = vpop.f32.mrb[6].mxu0 }
 0x10c   : > { %951 = vtanh.f32 %v421_v34  ;;  %v424_v38 = vadd.f32 %v837_v37, %v750_v24  ;;  %v415_v39 = vpop.f32.mrb[7].mxu0 }
 0x10d   : > { %953 = vtanh.f32 %v413_v36  ;;  %v416_v40 = vadd.f32 %v750_v24, %v415_v39 }
 0x10e   : > { %v944_v41 = vpop.eup %943  ;;  %955 = vtanh.f32 %v424_v38 }
 0x10f   : > { %v946_v42 = vpop.eup %945  ;;  %957 = vtanh.f32 %v416_v40 }
 0x110   : > { %v948_v43 = vpop.eup %947 }
 0x111   : > { %v950_v44 = vpop.eup %949  ;;  %v840_v45 = vpop.f32.mrb[8].mxu0  ;;  %v476_v46 = vpack.c.bf16 %v948_v43, %v944_v41 }
 0x112   : > { %v437_v47 = vadd.f32 %v840_v45, %v750_v24  ;;  %v428_v48 = vpop.f32.mrb[9].mxu0  ;;  %v475_v49 = vpack.c.bf16 %v950_v44, %v946_v42 }
 0x113   : > { %v429_v50 = vadd.f32 %v750_v24, %v428_v48  ;;  %v841_v51 = vpop.f32.mrb[10].mxu0 }
 0x114   : > { %959 = vtanh.f32 %v437_v47  ;;  %v440_v52 = vadd.f32 %v841_v51, %v750_v24  ;;  %v431_v53 = vpop.f32.mrb[11].mxu0  ;;  %862 = vmatprep.mubr.bf16.mxu1 %v475_v49 }
 0x115   : > { %961 = vtanh.f32 %v429_v50  ;;  %v432_v54 = vadd.f32 %v750_v24, %v431_v53  ;;  %863 = vmatmul.mubr.bf16.vlgmr.msra.gmra.mrb[0].mxu1 %v476_v46 }
 0x116   : > { %v952_v55 = vpop.eup %951  ;;  %963 = vtanh.f32 %v440_v52 }
 0x117   : > { %v954_v56 = vpop.eup %953  ;;  %965 = vtanh.f32 %v432_v54 }
 0x118   : > { %v956_v57 = vpop.eup %955 }
 0x119   : > { %v958_v58 = vpop.eup %957  ;;  %v844_v59 = vpop.f32.mrb[12].mxu0  ;;  %v478_v60 = vpack.c.bf16 %v956_v57, %v952_v55 }
 0x11a   : > { %v453_v61 = vadd.f32 %v844_v59, %v750_v24  ;;  %v444_v62 = vpop.f32.mrb[13].mxu0  ;;  %v477_v63 = vpack.c.bf16 %v958_v58, %v954_v56 }
 0x11b   : > { %v445_v0 = vadd.f32 %v750_v24, %v444_v62  ;;  %v845_v1 = vpop.f32.mrb[14].mxu0 }
 0x11c   : > { %967 = vtanh.f32 %v453_v61  ;;  %v456_v2 = vadd.f32 %v845_v1, %v750_v24  ;;  %v447_v3 = vpop.f32.mrb[15].mxu0  ;;  %866 = vmatprep.mubr.bf16.mxu1 %v477_v63 }
 0x11d   : > { %969 = vtanh.f32 %v445_v0  ;;  %v448_v4 = vadd.f32 %v750_v24, %v447_v3  ;;  %867 = vmatmul.mubr.bf16.gmra.mrb[4].mxu1 %v478_v60 }
 0x11e   : > { %v960_v5 = vpop.eup %959  ;;  %971 = vtanh.f32 %v456_v2 }
 0x11f   : > { %v962_v6 = vpop.eup %961  ;;  %973 = vtanh.f32 %v448_v4 }
 0x120   : > { %v964_v7 = vpop.eup %963 }
 0x121   : > { %v966_v8 = vpop.eup %965  ;;  %v480_v9 = vpack.c.bf16 %v964_v7, %v960_v5 }
 0x122   : > { %v479_v10 = vpack.c.bf16 %v966_v8, %v962_v6 }
 0x124   : > { %870 = vmatprep.mubr.bf16.mxu1 %v479_v10 }
 0x125   : > { %871 = vmatmul.mubr.bf16.gmra.mrb[8].mxu1 %v480_v9 }
 0x126   : > { %v968_v11 = vpop.eup %967 }
 0x127   : > { %v970_v12 = vpop.eup %969 }
 0x128   : > { %v972_v13 = vpop.eup %971 }
 0x129   : > { %v974_v14 = vpop.eup %973  ;;  %v482_v15 = vpack.c.bf16 %v972_v13, %v968_v11 }
 0x12a   : > { %v481_v16 = vpack.c.bf16 %v974_v14, %v970_v12 }
 0x12c   : > { %874 = vmatprep.mubr.bf16.mxu1 %v481_v16 }
 0x12d   : > { %875 = vmatmul.mubr.bf16.gmra.mrb[12].mxu1 %v482_v15 }
 0x1e8   : > { %v864_v18 = vpop.f32.mrb[0].mxu1 }
 0x1e9   : > { %v597_v19 = vadd.f32 %v864_v18, %v767_v17  ;;  %v588_v20 = vpop.f32.mrb[1].mxu1 }
 0x1ea   : > { %v589_v21 = vadd.f32 %v767_v17, %v588_v20  ;;  %v865_v22 = vpop.f32.mrb[2].mxu1 }
 0x1eb   : > { %653 = vst [vmem:[%s1191_s17 + $0x10] sm:$0xff] %v597_v19  ;;  %v600_v23 = vadd.f32 %v865_v22, %v767_v17  ;;  %v591_v24 = vpop.f32.mrb[3].mxu1 }
 0x1ec   : > { %651 = vst [vmem:[%s1191_s17] sm:$0xff] %v589_v21  ;;  %v592_v25 = vadd.f32 %v767_v17, %v591_v24 }
 0x1ed   : > { %654 = vst [vmem:[%s1191_s17 + $0x18] sm:$0xff] %v600_v23 }
 0x1ee   : > { %652 = vst [vmem:[%s1191_s17 + $0x8] sm:$0xff] %v592_v25 }
 0x1f0   : > { %v868_v26 = vpop.f32.mrb[4].mxu1 }
 0x1f1   : > { %v613_v27 = vadd.f32 %v868_v26, %v767_v17  ;;  %v604_v28 = vpop.f32.mrb[5].mxu1 }
 0x1f2   : > { %v605_v29 = vadd.f32 %v767_v17, %v604_v28  ;;  %v869_v30 = vpop.f32.mrb[6].mxu1 }
 0x1f3   : > { %657 = vst [vmem:[%s1191_s17 + $0x30] sm:$0xff] %v613_v27  ;;  %v616_v31 = vadd.f32 %v869_v30, %v767_v17  ;;  %v607_v32 = vpop.f32.mrb[7].mxu1 }
 0x1f4   : > { %655 = vst [vmem:[%s1191_s17 + $0x20] sm:$0xff] %v605_v29  ;;  %v608_v33 = vadd.f32 %v767_v17, %v607_v32 }
 0x1f5   : > { %658 = vst [vmem:[%s1191_s17 + $0x38] sm:$0xff] %v616_v31 }
 0x1f6   : > { %656 = vst [vmem:[%s1191_s17 + $0x28] sm:$0xff] %v608_v33 }
 0x1f8   : > { %v872_v34 = vpop.f32.mrb[8].mxu1 }
 0x1f9   : > { %v629_v35 = vadd.f32 %v872_v34, %v767_v17  ;;  %v620_v36 = vpop.f32.mrb[9].mxu1 }
 0x1fa   : > { %v621_v37 = vadd.f32 %v767_v17, %v620_v36  ;;  %v873_v38 = vpop.f32.mrb[10].mxu1 }
 0x1fb   : > { %661 = vst [vmem:[%s1191_s17 + $0x50] sm:$0xff] %v629_v35  ;;  %v632_v39 = vadd.f32 %v873_v38, %v767_v17  ;;  %v623_v40 = vpop.f32.mrb[11].mxu1 }
 0x1fc   : > { %659 = vst [vmem:[%s1191_s17 + $0x40] sm:$0xff] %v621_v37  ;;  %v624_v41 = vadd.f32 %v767_v17, %v623_v40 }
 0x1fd   : > { %662 = vst [vmem:[%s1191_s17 + $0x58] sm:$0xff] %v632_v39 }
 0x1fe   : > { %660 = vst [vmem:[%s1191_s17 + $0x48] sm:$0xff] %v624_v41 }
 0x200   : > { %v876_v42 = vpop.f32.mrb[12].mxu1 }
 0x201   : > { %v645_v43 = vadd.f32 %v876_v42, %v767_v17  ;;  %v636_v44 = vpop.f32.mrb[13].mxu1 }
 0x202   : > { %v637_v45 = vadd.f32 %v767_v17, %v636_v44  ;;  %v877_v46 = vpop.f32.mrb[14].mxu1 }
 0x203   : > { %665 = vst [vmem:[%s1191_s17 + $0x70] sm:$0xff] %v645_v43  ;;  %v648_v47 = vadd.f32 %v877_v46, %v767_v17  ;;  %v639_v48 = vpop.f32.mrb[15].mxu1 }
 0x204   : > { %663 = vst [vmem:[%s1191_s17 + $0x60] sm:$0xff] %v637_v45  ;;  %v640_v49 = vadd.f32 %v767_v17, %v639_v48 }
 0x205   : > { %666 = vst [vmem:[%s1191_s17 + $0x78] sm:$0xff] %v648_v47 }
 0x206   : > { %664 = vst [vmem:[%s1191_s17 + $0x68] sm:$0xff] %v640_v49 }
 0x207   : > { %988 = shalt.err (!%p985_p3)
}
 0x208   : > { %s989_s10 = scalar_lea.hbm %s1211_s6, 2048  ;;  %s993_s13 = scalar_lea.hbm %s1266_s5, 4096 }
 0x209   : > { %p990_p4 = scmp.ne.s32.totalorder %s1211_s6, %s989_s10  ;;  %p994_p9 = scmp.lt.u32.totalorder %s1211_s6, %s1266_s5 }
 0x20a   : > { %p995_p10 = scmp.lt.u32.totalorder %s993_s13, %s989_s10  ;;  %p997_p12 = scmp.lt.u32.totalorder %s989_s10, %s1211_s6 }
 0x20b   : > { %p991_p7 = pnand %p990_p4, %p1110_p5 }
 0x20c   : > { %p996_p11 = por %p995_p10, %p994_p9 }
 0x20d   : > { %p992_p8 = pneg %p991_p7 }
 0x20e   : > { %p998_p13 = por %p997_p12, %p996_p11 }
 0x210   : > { %p999_p0 = pnand %p998_p13, %p992_p8 }
 0x212   : > { %1002 = shalt.err (!%p999_p0)
}
 0x213   : > { %s1040_s17 = smov 128   ;;  %s1041_s23 = smov 8  }
 0x214   : > { %878 = dma.vmem_to_hbm [thread:$0]  (%p1110_p5), %s1213_s25, 2048, %s1211_s6, %s1220_s22, %s1040_s17, %s1040_s17, %s1041_s23  }
 0x215 PF: > { %p884_p1 = scmp.ge.s32.totalorder %s1037_s21, 2  ;;  %s696_s26 = sand.u32 1, %s1025_s18  }
 0x216   : > { %s697_s30 = scalar_lea.sflag [#allocation3], %s696_s26 }
 0x217   : > { %p881_p2 = pnand %p884_p1, %p1114_p6 }
 0x219   : > { %1020 = dma.done.wait (!%p881_p2), %s697_s30, 2048  }
 0x21a   : > { %1022 = vsyncadd (!%p881_p2), %s697_s30, 4294965248  ;;  %p15_p3 = scmp.ge.s32.totalorder %s1097_s24, 4   ;;  %s1269_s18 = smov %s1029_s19 }
 0x21b   : > { %s1270_s19 = smov %s1033_s20  ;;  %s1271_s20 = smov %s1108_s27 }
 0x21c   : > { %s1272_s21 = smov %s1097_s24  ;;  %17 = sbr.rel (!%p15_p3) target bundleno = 3 (0x3), region = 75 }
 0x223   :  { %702 = vsyncpa [#allocation3], 1 }
 0x224   :  { %704 = vsyncpa [#allocation3 + $0x1], 1 }

</bundles_post_ra>
